<compile_context>
chip_gen: v5e
topology: v5e:2x2
jax: 0.10.0
libtpu: 0.0.40
codegen_flags: <defaults>
</compile_context>

<pallas_src>
import math
import functools

import jax
import jax.numpy as jnp
from jax import lax
from jax.experimental import pallas as pl
from jax.experimental.pallas import tpu as pltpu


# ----------------------------------------------------------------------------
# Kernel 1: Conv1D == addmm(bias, x.view(-1, nx), weight), tiled.
# ----------------------------------------------------------------------------
def _conv1d_kernel(x_ref, w_ref, b_ref, o_ref, acc_ref):
    k = pl.program_id(2)

    @pl.when(k == 0)
    def _():
        acc_ref[...] = jnp.zeros_like(acc_ref)

    acc_ref[...] += jnp.dot(x_ref[...], w_ref[...],
                            preferred_element_type=jnp.float32)

    @pl.when(k == pl.num_programs(2) - 1)
    def _():
        # Bias added once, on the final K step only.
        o_ref[...] = (acc_ref[...] + b_ref[...].astype(jnp.float32)).astype(o_ref.dtype)


def _pick_tile(dim, cap, align):
    """Largest `align`-aligned divisor of dim that is <= cap (or the full dim)."""
    if dim <= cap:
        return dim
    t = (cap // align) * align
    while t >= align:
        if dim % t == 0:
            return t
        t -= align
    return dim  # fall back to full extent (always a legal block)


def conv1d(x2d, weight, bias, *, tm_cap=256, tn_cap=512, tk_cap=512):
    """x2d: (M, K), weight: (K, N), bias: (N,) -> (M, N)."""
    M, K = x2d.shape
    K2, N = weight.shape
    assert K == K2
    tm = _pick_tile(M, tm_cap, 8)
    tn = _pick_tile(N, tn_cap, 128)
    tk = _pick_tile(K, tk_cap, 128)
    grid = (M // tm, N // tn, K // tk)
    return pl.pallas_call(
        _conv1d_kernel,
        out_shape=jax.ShapeDtypeStruct((M, N), x2d.dtype),
        grid_spec=pltpu.PrefetchScalarGridSpec(
            num_scalar_prefetch=0,
            grid=grid,
            in_specs=[
                pl.BlockSpec((tm, tk), lambda i, j, k: (i, k)),
                pl.BlockSpec((tk, tn), lambda i, j, k: (k, j)),
                pl.BlockSpec((1, tn), lambda i, j, k: (0, j)),
            ],
            out_specs=pl.BlockSpec((tm, tn), lambda i, j, k: (i, j)),
            scratch_shapes=[pltpu.VMEM((tm, tn), jnp.float32)],
        ),
        compiler_params=pltpu.CompilerParams(
            dimension_semantics=("parallel", "parallel", "arbitrary"),
            vmem_limit_bytes=48 * 1024 * 1024,
        ),
    )(x2d, weight, bias.reshape(1, N))


# ----------------------------------------------------------------------------
# Kernel 2: causal multi-head attention, one batch element (all heads) per step.
#   qkv block: (1, T, 3*nx)  (fused c_attn output, q|k|v lane-concatenated)
#   out block: (1, T, nx)    -- merged-head, lane-dense layout.
# ----------------------------------------------------------------------------
def _attn_kernel(qkv_ref, o_ref, *, n_head, head_dim, scale):
    T = qkv_ref.shape[1]
    nx = n_head * head_dim

    qkv = qkv_ref[0]                         # (T, 3*nx)
    q = qkv[:, 0:nx]                         # static lane slices == torch .split
    k = qkv[:, nx:2 * nx]
    v = qkv[:, 2 * nx:3 * nx]

    if scale:
        # Fold 1/sqrt(hd) into q once (T*nx muls) instead of scaling (T,T) per head.
        q = q * jnp.asarray(1.0 / math.sqrt(float(head_dim)), q.dtype)

    # Causal tril "bias" buffer generated in-kernel (nd == ns == T): col <= row.
    row = lax.broadcasted_iota(jnp.int32, (T, T), 0)
    col = lax.broadcasted_iota(jnp.int32, (T, T), 1)
    allowed = col <= row                     # (T, T) bool, computed once, reused per head
    neg = jnp.float32(-10000.0)              # masked_bias

    outs = []
    for h in range(n_head):                  # static unroll over heads
        lo, hi = h * head_dim, (h + 1) * head_dim
        q_h = q[:, lo:hi]                    # (T, hd) lane slice == split_heads
        k_h = k[:, lo:hi]
        v_h = v[:, lo:hi]

        # QK^T via contraction over hd (in-kernel "trans_b"; no K relayout anywhere).
        s = lax.dot_general(q_h, k_h, (((1,), (1,)), ((), ())),
                            preferred_element_type=jnp.float32)     # (T, T)
        s = jnp.where(allowed, s, neg)

        # Numerically stable softmax; reciprocal goes to the (otherwise idle) EUP.
        s = s - jnp.max(s, axis=-1, keepdims=True)
        p = jnp.exp(s)
        p = p * pl.reciprocal(jnp.sum(p, axis=-1, keepdims=True), approx=True)

        a = jnp.dot(p.astype(v_h.dtype), v_h,
                    preferred_element_type=jnp.float32)             # (T, hd)
        outs.append(a)

    # merge_heads in-register, then one lane-dense (T, nx) store.
    o_ref[0] = jnp.concatenate(outs, axis=-1).astype(o_ref.dtype)


def attention_core(qkv, *, n_head, scale):
    """qkv: (B, T, 3*nx) fused c_attn output -> (B, T, nx) merged-head attention."""
    B, T, three_nx = qkv.shape
    nx = three_nx // 3
    hd = nx // n_head
    kernel = functools.partial(_attn_kernel, n_head=n_head, head_dim=hd, scale=scale)
    return pl.pallas_call(
        kernel,
        out_shape=jax.ShapeDtypeStruct((B, T, nx), qkv.dtype),
        grid_spec=pltpu.PrefetchScalarGridSpec(
            num_scalar_prefetch=0,
            grid=(B,),
            in_specs=[
                pl.BlockSpec((1, T, 3 * nx), lambda b: (b, 0, 0)),
            ],
            out_specs=pl.BlockSpec((1, T, nx), lambda b: (b, 0, 0)),
        ),
        compiler_params=pltpu.CompilerParams(
            dimension_semantics=("parallel",),            # B axis shards across TCs (v7x)
            vmem_limit_bytes=64 * 1024 * 1024,
        ),
    )(qkv)


# ----------------------------------------------------------------------------
# Full Attention.forward (self-attention path)
# ----------------------------------------------------------------------------
def attention_forward(hidden_states, params, *, n_head, scale):
    B, T, nx = hidden_states.shape

    # c_attn: (B*T, nx) @ (nx, 3*nx) + bias  -> fused QKV slab (no jnp.split copies).
    x2d = hidden_states.reshape(B * T, nx)
    qkv = conv1d(x2d, params["c_attn_w"], params["c_attn_b"]).reshape(B, T, 3 * nx)

    # split_heads / QK^T transpose / causal mask / merge_heads all happen inside the
    # kernel via static lane slices and in-kernel iota: no wrapper-side HBM relayouts.
    a = attention_core(qkv, n_head=n_head, scale=scale)

    # c_proj; resid_dropout is identity in eval mode.
    out = conv1d(a.reshape(B * T, nx), params["c_proj_w"], params["c_proj_b"])
    return out.reshape(B, T, nx)


# ----------------------------------------------------------------------------
# Pure-JAX reference (mirrors the PyTorch code) for correctness checks.
# ----------------------------------------------------------------------------
def attention_reference(hidden_states, params, *, n_head, scale):
    B, T, nx = hidden_states.shape
    hd = nx // n_head
    x2d = hidden_states.reshape(B * T, nx)
    qkv = (x2d @ params["c_attn_w"] + params["c_attn_b"]).reshape(B, T, 3 * nx)
    query, key, value = jnp.split(qkv, 3, axis=2)
    q = query.reshape(B, T, n_head, hd).transpose(0, 2, 1, 3)
    k = key.reshape(B, T, n_head, hd).transpose(0, 2, 3, 1)
    v = value.reshape(B, T, n_head, hd).transpose(0, 2, 1, 3)
    w = jnp.einsum("bhtd,bhds->bhts", q, k)
    if scale:
        w = w / math.sqrt(float(hd))
    mask = jnp.tril(jnp.ones((T, T), dtype=bool))
    w = jnp.where(mask[None, None], w, jnp.float32(-10000.0))
    w = jax.nn.softmax(w, axis=-1)
    a = jnp.einsum("bhts,bhsd->bhtd", w, v)
    a = a.transpose(0, 2, 1, 3).reshape(B * T, nx)
    out = (a @ params["c_proj_w"] + params["c_proj_b"]).reshape(B, T, nx)
    return out


if __name__ == "__main__":
    # Small config consistent with the module: nx=32, n_head=4, n_ctx=seq=8.
    B, T, nx, n_head = 2, 8, 32, 4
    scale = True

    key0 = jax.random.PRNGKey(0)
    k_x, k_wa, k_wp = jax.random.split(key0, 3)

    # Conv1D init: weight ~ N(0, 0.02), bias = 0.
    params = {
        "c_attn_w": 0.02 * jax.random.normal(k_wa, (nx, 3 * nx), jnp.float32),
        "c_attn_b": jnp.zeros((3 * nx,), jnp.float32),
        "c_proj_w": 0.02 * jax.random.normal(k_wp, (nx, nx), jnp.float32),
        "c_proj_b": jnp.zeros((nx,), jnp.float32),
    }
    hidden_states = jax.random.normal(k_x, (B, T, nx), jnp.float32)

    ref = attention_reference(hidden_states, params, n_head=n_head, scale=scale)

    # fp32 path (tolerance slightly loosened for the approx EUP reciprocal).
    out = attention_forward(hidden_states, params, n_head=n_head, scale=scale)
    out = jax.block_until_ready(out)
    assert out.shape == (B, T, nx)
    assert jnp.allclose(out, ref, atol=2e-3, rtol=2e-3), "fp32 mismatch vs reference"

    # bf16 operands (fp32 MXU accumulation) -- the perf-relevant dtype on v6e/v7x.
    params_bf16 = jax.tree_util.tree_map(lambda p: p.astype(jnp.bfloat16), params)
    hidden_bf16 = hidden_states.astype(jnp.bfloat16)
    out_bf16 = attention_forward(hidden_bf16, params_bf16, n_head=n_head, scale=scale)
    out_bf16 = jax.block_until_ready(out_bf16)
    assert out_bf16.shape == (B, T, nx)
    assert jnp.allclose(out_bf16.astype(jnp.float32), ref, atol=1e-2), "bf16 mismatch vs reference"

    print("KERNEL_OK")
</pallas_src>

<mosaic_0001>
module attributes {stable_mosaic.version = 11 : i64} {
  func.func @_conv1d_kernel(%arg0: i32, %arg1: i32, %arg2: i32, %arg3: memref<16x32xf32, #tpu.memory_space<vmem>>, %arg4: memref<32x96xf32, #tpu.memory_space<vmem>>, %arg5: memref<1x96xf32, #tpu.memory_space<vmem>>, %arg6: memref<16x96xf32, #tpu.memory_space<vmem>>, %arg7: memref<16x96xf32, #tpu.memory_space<vmem>>) attributes {dimension_semantics = [#tpu.dimension_semantics<parallel>, #tpu.dimension_semantics<parallel>, #tpu.dimension_semantics<arbitrary>], iteration_bounds = array<i64: 1, 1, 1>, scalar_prefetch = 0 : i64, scratch_operands = 1 : i64, tpu.core_type = #tpu.core_type<tc>, window_params = [{transform_indices = @transform_0, window_bounds = array<i64: 16, 32>}, {transform_indices = @transform_1, window_bounds = array<i64: 32, 96>}, {transform_indices = @transform_2, window_bounds = array<i64: 1, 96>}, {transform_indices = @transform_3, window_bounds = array<i64: 16, 96>}]} {
    %c0_i32 = arith.constant 0 : i32
    %0 = arith.cmpi eq, %arg2, %c0_i32 : i32
    %1 = arith.extui %0 : i1 to i32
    %c0_i32_0 = arith.constant 0 : i32
    %2 = arith.cmpi ne, %1, %c0_i32_0 : i32
    scf.if %2 {
      %cst_10 = arith.constant 0.000000e+00 : f32
      %12 = vector.broadcast %cst_10 : f32 to vector<16x96xf32>
      %c0_11 = arith.constant 0 : index
      %c0_12 = arith.constant 0 : index
      %13 = vector.load %arg7[%c0_11, %c0_12] : memref<16x96xf32, #tpu.memory_space<vmem>>, vector<16x96xf32>
      tpu.vector_store %arg7[%c0_11, %c0_12], %12 {strides = array<i32>} : memref<16x96xf32, #tpu.memory_space<vmem>>, vector<16x96xf32>,
    } else {
    }
    %c0 = arith.constant 0 : index
    %c0_1 = arith.constant 0 : index
    %3 = vector.load %arg7[%c0, %c0_1] : memref<16x96xf32, #tpu.memory_space<vmem>>, vector<16x96xf32>
    %c0_2 = arith.constant 0 : index
    %c0_3 = arith.constant 0 : index
    %4 = vector.load %arg3[%c0_2, %c0_3] : memref<16x32xf32, #tpu.memory_space<vmem>>, vector<16x32xf32>
    %c0_4 = arith.constant 0 : index
    %c0_5 = arith.constant 0 : index
    %5 = vector.load %arg4[%c0_4, %c0_5] : memref<32x96xf32, #tpu.memory_space<vmem>>, vector<32x96xf32>
    %cst = arith.constant dense<0.000000e+00> : vector<16x96xf32>
    %6 = tpu.matmul %4, %5, %cst {dimension_numbers = #tpu.dot_dimension_numbers<[1], [0], [0], [1], [0, 0, 1, 1], [], []>} : vector<16x32xf32>, vector<32x96xf32>, vector<16x96xf32> -> vector<16x96xf32>
    %7 = arith.addf %3, %6 : vector<16x96xf32>
    %c0_6 = arith.constant 0 : index
    %c0_7 = arith.constant 0 : index
    %8 = vector.load %arg7[%c0_6, %c0_7] : memref<16x96xf32, #tpu.memory_space<vmem>>, vector<16x96xf32>
    tpu.vector_store %arg7[%c0_6, %c0_7], %7 {strides = array<i32>} : memref<16x96xf32, #tpu.memory_space<vmem>>, vector<16x96xf32>,
    %c0_i32_8 = arith.constant 0 : i32
    %9 = arith.cmpi eq, %arg2, %c0_i32_8 : i32
    %10 = arith.extui %9 : i1 to i32
    %c0_i32_9 = arith.constant 0 : i32
    %11 = arith.cmpi ne, %10, %c0_i32_9 : i32
    scf.if %11 {
      %c0_10 = arith.constant 0 : index
      %c0_11 = arith.constant 0 : index
      %12 = vector.load %arg7[%c0_10, %c0_11] : memref<16x96xf32, #tpu.memory_space<vmem>>, vector<16x96xf32>
      %c0_12 = arith.constant 0 : index
      %c0_13 = arith.constant 0 : index
      %13 = vector.load %arg5[%c0_12, %c0_13] : memref<1x96xf32, #tpu.memory_space<vmem>>, vector<1x96xf32>
      %14 = vector.broadcast %13 : vector<1x96xf32> to vector<16x96xf32>
      %15 = arith.addf %12, %14 : vector<16x96xf32>
      %c0_14 = arith.constant 0 : index
      %c0_15 = arith.constant 0 : index
      %16 = vector.load %arg6[%c0_14, %c0_15] : memref<16x96xf32, #tpu.memory_space<vmem>>, vector<16x96xf32>
      tpu.vector_store %arg6[%c0_14, %c0_15], %15 {strides = array<i32>} : memref<16x96xf32, #tpu.memory_space<vmem>>, vector<16x96xf32>,
    } else {
    }
    return
  }
  func.func @transform_0(%arg0: i32, %arg1: i32, %arg2: i32) -> (i32, i32) {
    %c0_i32 = arith.constant 0 : i32
    return %arg0, %arg2 : i32, i32
  }
  func.func @transform_1(%arg0: i32, %arg1: i32, %arg2: i32) -> (i32, i32) {
    %c0_i32 = arith.constant 0 : i32
    return %arg2, %arg1 : i32, i32
  }
  func.func @transform_2(%arg0: i32, %arg1: i32, %arg2: i32) -> (i32, i32) {
    %c0_i32 = arith.constant 0 : i32
    %c0_i32_0 = arith.constant 0 : i32
    return %c0_i32, %arg1 : i32, i32
  }
  func.func @transform_3(%arg0: i32, %arg1: i32, %arg2: i32) -> (i32, i32) {
    %c0_i32 = arith.constant 0 : i32
    return %arg0, %arg1 : i32, i32
  }
}

</mosaic_0001>

<bundles_post_ra>
// kernel: tpu_custom_call.1
= control target key start
LH: loop header
LB: loop body
LE: loop exit
PB: predicated region body
PF: predicated region fallthrough
CT: control target
= control target key end

     0   :  { %8 = vsyncpa [#allocation4], 0  ;;  %s274_s0 = inlined_call_operand.hbm [shape: f32[16,32], index: 0, kind: input, shape index: {}]   ;;  %s275_s1 = inlined_call_operand.hbm [shape: f32[32,96], index: 1, kind: input, shape index: {}]   ;;  %s276_s2 = inlined_call_operand.vmem [shape: f32[1,96], index: 2, kind: input, shape index: {}]   ;;  %s277_s3 = inlined_call_operand.hbm [shape: f32[16,96], index: 3, kind: output, shape index: {}]  }
   0x1   :  { %9 = vsyncpa [#allocation7], 0 }
   0x2   :  { %10 = vsyncpa [#allocation5], 0  ;;  %s15_s14 = sshll.u32 %s274_s0, 4  ;;  %s221_s15 = smov [#allocation3]   ;;  %s16_s14 = int_to_ptr.hbm [resolvable:$true] %s15_s14 }
   0x3   :  { %s17_s16 = sshll.u32 %s221_s15, 4  ;;  %s28_s19 = sshll.u32 %s275_s1, 4  ;;  %s18_s16 = int_to_ptr.vmem [resolvable:$true] %s17_s16  ;;  %s29_s19 = int_to_ptr.hbm [resolvable:$true] %s28_s19 }
   0x4   :  { %s222_s20 = smov 128   ;;  %s223_s21 = smov 8  }
   0x5   :  { %23 = dma.hbm_to_vmem [thread:$0]  %s16_s14, 256, %s18_s16, [#allocation4], %s222_s20, %s222_s20, %s223_s21  }
   0x6   :  { %s224_s22 = smov [#allocation6]  }
   0x7   :  { %s30_s23 = sshll.u32 %s224_s22, 4  ;;  %s31_s23 = int_to_ptr.vmem [resolvable:$true] %s30_s23 }
   0x8   :  { %36 = dma.hbm_to_vmem [thread:$0]  %s29_s19, 512, %s31_s23, [#allocation7], %s222_s20, %s222_s20, %s223_s21  }
   0x9   :  { %215 = dma.done.wait [#allocation4], 256  }
   0xa   :  { %216 = vsyncadd [#allocation4], 4294967040 }
   0xb   :  { %217 = dma.done.wait [#allocation7], 512  }
   0xc   :  { %218 = vsyncadd [#allocation7], 4294966784  ;;  %vm51_vm0 = vcmask 785408   ;;  %v225_v0 = vmov 0.0   ;;  %v61_v1 = vld [vmem:[#allocation6 + $0x18] sm:$0xff]  ;;  %v60_v2 = vld [vmem:[#allocation6 + $0x10] sm:$0xff] }
   0xd   :  { %52 = vst.msk [vmem:[#allocation2] sm:$0xff] %vm51_vm0, %v225_v0  ;;  %81 = vmatpush.msra.mxu0 %v61_v1  ;;  %132 = vmatpush.msra.mxu1 %v61_v1  ;;  %v59_v3 = vld [vmem:[#allocation6 + $0x8] sm:$0xff]  ;;  %v58_v4 = vld [vmem:[#allocation6] sm:$0xff]  ;;  %v56_v5 = vld [vmem:[#allocation3] sm:$0xff]  ;;  %vm62_vm1 = vcmask 261120   ;;  %s226_s24 = smov [#allocation8]  }
   0xe   :  { %53 = vst.msk [vmem:[#allocation2 + $0x8] sm:$0xff] %vm51_vm0, %v225_v0  ;;  %v57_v6 = vld [vmem:[#allocation3 + $0x8] sm:$0xff]  ;;  %v142_v13 = vld [vmem:[%s276_s2] ss:$0 sm:$0xff]  ;;  %s114_s25 = sshll.u32 %s226_s24, 4  ;;  %s116_s28 = sshll.u32 %s277_s3, 4  ;;  %s115_s25 = int_to_ptr.vmem [resolvable:$true] %s114_s25  ;;  %s117_s28 = int_to_ptr.hbm [resolvable:$true] %s116_s28 }
   0xf   :  { %82 = vmatpush.msra.mxu0 %v60_v2  ;;  %133 = vmatpush.msra.mxu1 %v60_v2 }
  0x11   :  { %83 = vmatpush.msra.mxu0 %v59_v3  ;;  %134 = vmatpush.msra.mxu1 %v59_v3 }
  0x13   :  { %84 = vmatpush.msra.mxu0 %v58_v4  ;;  %135 = vmatpush.msra.mxu1 %v58_v4 }
  0x14   :  { %130 = vmatmul.msk.f32.vlgmr.msra.gmra.mxu0 %vm62_vm1, %v56_v5  ;;  %131 = vmatmul.msk.f32.vlgmr.msra.gmra.mxu1 %vm62_vm1, %v57_v6  ;;  %v54_v7 = vld [vmem:[#allocation2] sm:$0xff] }
  0x15   :  { %v55_v8 = vld [vmem:[#allocation2 + $0x8] sm:$0xff] }
  0x91   :  { %v86_v9 = vpop.f32.mrf.mxu0  ;;  %v89_v10 = vpop.f32.mrf.mxu1 }
  0x92   :  { %v92_v11 = vadd.f32 %v86_v9, %v54_v7  ;;  %v93_v12 = vadd.f32 %v89_v10, %v55_v8 }
  0x94   :  { %95 = vst.msk [vmem:[#allocation2] sm:$0xff] %vm51_vm0, %v92_v11 }
  0x95   :  { %96 = vst.msk [vmem:[#allocation2 + $0x8] sm:$0xff] %vm51_vm0, %v93_v12 }
  0x9b   :  { %v100_v14 = vld [vmem:[#allocation2] sm:$0xff] }
  0x9c   :  { %v101_v15 = vld [vmem:[#allocation2 + $0x8] sm:$0xff]  ;;  %v106_v16 = vadd.f32 %v142_v13, %v100_v14 }
  0x9d   :  { %v107_v17 = vadd.f32 %v142_v13, %v101_v15 }
  0x9e   :  { %108 = vst.msk [vmem:[#allocation8] sm:$0xff] %vm51_vm0, %v106_v16 }
  0x9f   :  { %109 = vst.msk [vmem:[#allocation8 + $0x8] sm:$0xff] %vm51_vm0, %v107_v17 }
  0xa0   :  { %122 = dma.vmem_to_hbm [thread:$0]  %s115_s25, 256, %s117_s28, [#allocation5], %s222_s20, %s222_s20, %s223_s21  }
  0xa1   :  { %219 = dma.done.wait [#allocation5], 256  }
  0xa2   :  { %220 = vsyncadd [#allocation5], 4294967040 }
  0xa3   :  { %127 = vsyncpa [#allocation4], 1 }
  0xa4   :  { %128 = vsyncpa [#allocation7], 1 }
  0xa5   :  { %129 = vsyncpa [#allocation5], 1 }

</bundles_post_ra>
